<compile_context>
chip_gen: v7x
topology: tpu7x:2x2x1
jax: 0.10.0
libtpu: 0.0.40
codegen_flags: <defaults>
</compile_context>

<pallas_src>
import jax
import jax.numpy as jnp
from jax import lax
from jax.experimental import pallas as pl
from jax.experimental.pallas import tpu as pltpu


def decoder_unit_kernel(
    x_ref,       # [T, X]   feature sequence for this batch element
    s_ref,       # [1, S]   previous hidden state
    y_ref,       # [1, E]   previous output embedding
    wx_ref,      # [X, A]   xEmbed weight^T
    bx_ref,      # [1, A]
    ws_ref,      # [S, A]   sEmbed weight^T
    bs_ref,      # [1, A]
    ww_ref,      # [1, A]   wEmbed weight (row vector)
    bw_ref,      # [1, 1]
    wihy_ref,    # [E, 3S]  GRU weight_ih^T rows that multiply yPrev
    wihx_ref,    # [X, 3S]  GRU weight_ih^T rows that multiply context
    bih_ref,     # [1, 3S]
    whh_ref,     # [S, 3S]  GRU weight_hh^T
    bhh_ref,     # [1, 3S]
    wfc_ref,     # [S, Y]   fc weight^T
    bfc_ref,     # [1, Y]
    out_ref,     # [1, Y]
    state_ref,   # [1, S]
):
    S = s_ref.shape[1]

    x = x_ref[...]            # [T, X]  f32
    s = s_ref[...]            # [1, S]
    y = y_ref[...]            # [1, E]

    # ---------------- AttentionUnit (all 2-D, no reshapes) ----------------
    xProj = jnp.dot(x, wx_ref[...], preferred_element_type=jnp.float32) + bx_ref[...]   # [T, A]
    sProj = jnp.dot(s, ws_ref[...], preferred_element_type=jnp.float32) + bs_ref[...]   # [1, A]
    tanh_sum = jnp.tanh(xProj + sProj)                                                   # [T, A]

    # e[t] = wEmbed . tanh_sum[t]  ->  [T, 1]   (lane-broadcast mul + lane reduce)
    e = jnp.sum(tanh_sum * ww_ref[...], axis=1, keepdims=True) + bw_ref[...]             # [T, 1]

    # softmax over T (sublane axis); reciprocal on the EUP slot.
    e = e - jnp.max(e, axis=0, keepdims=True)
    pe = jnp.exp(e)
    alpha = pe * pl.reciprocal(jnp.sum(pe, axis=0, keepdims=True), approx=True)          # [T, 1]

    # context = alpha^T @ x on the MXU  ->  [1, X]
    context = lax.dot_general(
        alpha, x, dimension_numbers=(((0,), (0,)), ((), ())),
        preferred_element_type=jnp.float32)

    # ---------------- GRU single step (weight_ih pre-split: no concat) ----------------
    gi = (jnp.dot(y, wihy_ref[...], preferred_element_type=jnp.float32)
          + jnp.dot(context, wihx_ref[...], preferred_element_type=jnp.float32)
          + bih_ref[...])                                                                 # [1, 3S]
    gh = jnp.dot(s, whh_ref[...], preferred_element_type=jnp.float32) + bhh_ref[...]      # [1, 3S]

    i_r, i_z, i_n = gi[:, 0:S], gi[:, S:2 * S], gi[:, 2 * S:3 * S]
    h_r, h_z, h_n = gh[:, 0:S], gh[:, S:2 * S], gh[:, 2 * S:3 * S]

    r = jax.nn.sigmoid(i_r + h_r)
    z = jax.nn.sigmoid(i_z + h_z)
    n = jnp.tanh(i_n + r * h_n)
    h_new = (1.0 - z) * n + z * s                                                         # [1, S]

    state_ref[...] = h_new.astype(state_ref.dtype)

    # ---------------- fc ----------------
    out_ref[...] = (
        jnp.dot(h_new, wfc_ref[...], preferred_element_type=jnp.float32) + bfc_ref[...]
    ).astype(out_ref.dtype)


def decoder_unit_forward(x, sPrev, yPrev, params):
    """x: [B, T, xDim], sPrev: [1, B, sDim], yPrev: [B, embDim]."""
    B, T, X = x.shape
    S = sPrev.shape[-1]
    E = yPrev.shape[-1]
    Y = params["fc_w"].shape[1]

    # Reshape carries so every per-sample block is a clean 2-D [1, dim] tile.
    s3 = sPrev.reshape(B, 1, S)    # [1,B,S] -> [B,1,S]
    y3 = yPrev.reshape(B, 1, E)

    # Split GRU input weights: the module feeds cat([yPrev, context], 1) to the GRU,
    # so rows 0:E multiply yPrev and rows E: multiply context.
    wih_y = params["gru_wih"][:E]
    wih_x = params["gru_wih"][E:]

    def batch_spec(tail):
        # Leading batch dim squeezed; one batch element per grid step.
        return pl.BlockSpec((None,) + tail, lambda b: (b,) + (0,) * len(tail))

    def weight_spec(arr):
        # Full-shape block, constant index -> stays resident in VMEM across the grid.
        return pl.BlockSpec(arr.shape, lambda b: (0, 0))

    args = (
        x, s3, y3,
        params["xEmbed_w"], params["xEmbed_b"],
        params["sEmbed_w"], params["sEmbed_b"],
        params["wEmbed_w"], params["wEmbed_b"],
        wih_y, wih_x, params["gru_bih"],
        params["gru_whh"], params["gru_bhh"],
        params["fc_w"], params["fc_b"],
    )

    in_specs = [
        batch_spec((T, X)),      # x
        batch_spec((1, S)),      # sPrev
        batch_spec((1, E)),      # yPrev
    ] + [weight_spec(a) for a in args[3:]]

    out, state = pl.pallas_call(
        decoder_unit_kernel,
        grid=(B,),
        out_shape=(
            jax.ShapeDtypeStruct((B, 1, Y), jnp.float32),
            jax.ShapeDtypeStruct((B, 1, S), jnp.float32),
        ),
        in_specs=in_specs,
        out_specs=(batch_spec((1, Y)), batch_spec((1, S))),
        compiler_params=pltpu.CompilerParams(
            dimension_semantics=("parallel",)),
    )(*args)

    return out.reshape(B, Y), state.reshape(1, B, S)


def make_params(key, sDim, xDim, yDim, attDim, embDim):
    """Deterministic synthetic parameters, PyTorch-default-style uniform init.
    Linear/GRU weights are stored transposed ([in, out]) for `x @ W` in-kernel."""
    ks = jax.random.split(key, 12)

    def u(k, shape, fan_in):
        bound = 1.0 / jnp.sqrt(jnp.float32(fan_in))
        return jax.random.uniform(k, shape, jnp.float32, -bound, bound)

    p = {}
    # AttentionUnit
    p["sEmbed_w"] = u(ks[0], (sDim, attDim), sDim)
    p["sEmbed_b"] = u(ks[1], (1, attDim), sDim)
    p["xEmbed_w"] = u(ks[2], (xDim, attDim), xDim)
    p["xEmbed_b"] = u(ks[3], (1, attDim), xDim)
    p["wEmbed_w"] = u(ks[4], (1, attDim), attDim)
    p["wEmbed_b"] = u(ks[5], (1, 1), attDim)
    # GRU (input_size = embDim + xDim in cat order [yPrev, context], hidden_size = sDim)
    in_sz = embDim + xDim
    p["gru_wih"] = u(ks[6], (in_sz, 3 * sDim), sDim)
    p["gru_bih"] = u(ks[7], (1, 3 * sDim), sDim)
    p["gru_whh"] = u(ks[8], (sDim, 3 * sDim), sDim)
    p["gru_bhh"] = u(ks[9], (1, 3 * sDim), sDim)
    # fc
    p["fc_w"] = u(ks[10], (sDim, yDim), sDim)
    p["fc_b"] = u(ks[11], (1, yDim), sDim)
    return p


def reference_forward(x, sPrev, yPrev, p):
    """Pure-JAX reference mirroring the PyTorch forward (exact softmax, concat form)."""
    B, T, X = x.shape
    S = sPrev.shape[-1]
    s = sPrev.reshape(B, S)
    xProj = (x.reshape(B * T, X) @ p["xEmbed_w"] + p["xEmbed_b"]).reshape(B, T, -1)
    sProj = s @ p["sEmbed_w"] + p["sEmbed_b"]
    tanh_sum = jnp.tanh(sProj[:, None, :] + xProj)
    e = (tanh_sum * p["wEmbed_w"][0]).sum(-1) + p["wEmbed_b"][0, 0]
    alpha = jax.nn.softmax(e, axis=1)
    context = jnp.einsum("bt,btx->bx", alpha, x)
    inp = jnp.concatenate([yPrev, context], axis=1)
    gi = inp @ p["gru_wih"] + p["gru_bih"]
    gh = s @ p["gru_whh"] + p["gru_bhh"]
    i_r, i_z, i_n = jnp.split(gi, 3, axis=1)
    h_r, h_z, h_n = jnp.split(gh, 3, axis=1)
    r = jax.nn.sigmoid(i_r + h_r)
    z = jax.nn.sigmoid(i_z + h_z)
    n = jnp.tanh(i_n + r * h_n)
    h_new = (1.0 - z) * n + z * s
    out = h_new @ p["fc_w"] + p["fc_b"]
    return out, h_new.reshape(1, B, S)


if __name__ == "__main__":
    # Small shapes consistent with the module (B chosen sublane-friendly).
    B, T = 8, 8
    sDim, xDim, yDim, attDim = 32, 32, 16, 32
    embDim = attDim  # self.embDim = attDim; GRU input = embDim + xDim

    key = jax.random.PRNGKey(0)
    kx, ks, ky, kp = jax.random.split(key, 4)

    x = jax.random.normal(kx, (B, T, xDim), jnp.float32)
    sPrev = jax.random.normal(ks, (1, B, sDim), jnp.float32)
    yPrev = jax.random.normal(ky, (B, embDim), jnp.float32)

    params = make_params(kp, sDim, xDim, yDim, attDim, embDim)

    out, state = decoder_unit_forward(x, sPrev, yPrev, params)
    out = jax.block_until_ready(out)
    state = jax.block_until_ready(state)

    ref_out, ref_state = reference_forward(x, sPrev, yPrev, params)
    assert out.shape == (B, yDim) and state.shape == (1, B, sDim)
    # 5e-3 tolerance covers the EUP approx-reciprocal used in the softmax denominator.
    assert jnp.allclose(out, ref_out, rtol=5e-3, atol=5e-3), float(jnp.max(jnp.abs(out - ref_out)))
    assert jnp.allclose(state, ref_state, rtol=5e-3, atol=5e-3), float(jnp.max(jnp.abs(state - ref_state)))

    print("KERNEL_OK")
</pallas_src>

<mosaic_0001>
module attributes {stable_mosaic.version = 11 : i64} {
  func.func @decoder_unit_kernel(%arg0: i32, %arg1: memref<1x8x32xf32, #tpu.memory_space<vmem>>, %arg2: memref<1x1x32xf32, #tpu.memory_space<vmem>>, %arg3: memref<1x1x32xf32, #tpu.memory_space<vmem>>, %arg4: memref<32x32xf32, #tpu.memory_space<vmem>>, %arg5: memref<1x32xf32, #tpu.memory_space<vmem>>, %arg6: memref<32x32xf32, #tpu.memory_space<vmem>>, %arg7: memref<1x32xf32, #tpu.memory_space<vmem>>, %arg8: memref<1x32xf32, #tpu.memory_space<vmem>>, %arg9: memref<1x1xf32, #tpu.memory_space<vmem>>, %arg10: memref<32x96xf32, #tpu.memory_space<vmem>>, %arg11: memref<32x96xf32, #tpu.memory_space<vmem>>, %arg12: memref<1x96xf32, #tpu.memory_space<vmem>>, %arg13: memref<32x96xf32, #tpu.memory_space<vmem>>, %arg14: memref<1x96xf32, #tpu.memory_space<vmem>>, %arg15: memref<32x16xf32, #tpu.memory_space<vmem>>, %arg16: memref<1x16xf32, #tpu.memory_space<vmem>>, %arg17: memref<1x1x16xf32, #tpu.memory_space<vmem>>, %arg18: memref<1x1x32xf32, #tpu.memory_space<vmem>>) attributes {dimension_semantics = [#tpu.dimension_semantics<parallel>], iteration_bounds = array<i64: 8>, scalar_prefetch = 0 : i64, scratch_operands = 0 : i64, tpu.core_type = #tpu.core_type<tc>, window_params = [{transform_indices = @transform_0, window_bounds = array<i64: 1, 8, 32>}, {transform_indices = @transform_1, window_bounds = array<i64: 1, 1, 32>}, {transform_indices = @transform_2, window_bounds = array<i64: 1, 1, 32>}, {pipeline_mode = #tpu.pipeline_mode<synchronous>, transform_indices = @transform_3, window_bounds = array<i64: 32, 32>}, {pipeline_mode = #tpu.pipeline_mode<synchronous>, transform_indices = @transform_4, window_bounds = array<i64: 1, 32>}, {pipeline_mode = #tpu.pipeline_mode<synchronous>, transform_indices = @transform_5, window_bounds = array<i64: 32, 32>}, {pipeline_mode = #tpu.pipeline_mode<synchronous>, transform_indices = @transform_6, window_bounds = array<i64: 1, 32>}, {pipeline_mode = #tpu.pipeline_mode<synchronous>, transform_indices = @transform_7, window_bounds = array<i64: 1, 32>}, {pipeline_mode = #tpu.pipeline_mode<synchronous>, transform_indices = @transform_8, window_bounds = array<i64: 1, 1>}, {pipeline_mode = #tpu.pipeline_mode<synchronous>, transform_indices = @transform_9, window_bounds = array<i64: 32, 96>}, {pipeline_mode = #tpu.pipeline_mode<synchronous>, transform_indices = @transform_10, window_bounds = array<i64: 32, 96>}, {pipeline_mode = #tpu.pipeline_mode<synchronous>, transform_indices = @transform_11, window_bounds = array<i64: 1, 96>}, {pipeline_mode = #tpu.pipeline_mode<synchronous>, transform_indices = @transform_12, window_bounds = array<i64: 32, 96>}, {pipeline_mode = #tpu.pipeline_mode<synchronous>, transform_indices = @transform_13, window_bounds = array<i64: 1, 96>}, {pipeline_mode = #tpu.pipeline_mode<synchronous>, transform_indices = @transform_14, window_bounds = array<i64: 32, 16>}, {pipeline_mode = #tpu.pipeline_mode<synchronous>, transform_indices = @transform_15, window_bounds = array<i64: 1, 16>}, {transform_indices = @transform_16, window_bounds = array<i64: 1, 1, 16>}, {transform_indices = @transform_17, window_bounds = array<i64: 1, 1, 32>}]} {
    %c0 = arith.constant 0 : index
    %c0_0 = arith.constant 0 : index
    %c0_1 = arith.constant 0 : index
    %0 = vector.load %arg1[%c0, %c0_0, %c0_1] : memref<1x8x32xf32, #tpu.memory_space<vmem>>, vector<1x8x32xf32>
    %1 = vector.shape_cast %0 : vector<1x8x32xf32> to vector<8x32xf32>
    %c0_2 = arith.constant 0 : index
    %c0_3 = arith.constant 0 : index
    %c0_4 = arith.constant 0 : index
    %2 = vector.load %arg2[%c0_2, %c0_3, %c0_4] : memref<1x1x32xf32, #tpu.memory_space<vmem>>, vector<1x1x32xf32>
    %3 = vector.shape_cast %2 : vector<1x1x32xf32> to vector<1x32xf32>
    %c0_5 = arith.constant 0 : index
    %c0_6 = arith.constant 0 : index
    %c0_7 = arith.constant 0 : index
    %4 = vector.load %arg3[%c0_5, %c0_6, %c0_7] : memref<1x1x32xf32, #tpu.memory_space<vmem>>, vector<1x1x32xf32>
    %5 = vector.shape_cast %4 : vector<1x1x32xf32> to vector<1x32xf32>
    %c0_8 = arith.constant 0 : index
    %c0_9 = arith.constant 0 : index
    %6 = vector.load %arg4[%c0_8, %c0_9] : memref<32x32xf32, #tpu.memory_space<vmem>>, vector<32x32xf32>
    %cst = arith.constant dense<0.000000e+00> : vector<8x32xf32>
    %7 = tpu.matmul %1, %6, %cst {dimension_numbers = #tpu.dot_dimension_numbers<[1], [0], [0], [1], [0, 0, 1, 1], [], []>} : vector<8x32xf32>, vector<32x32xf32>, vector<8x32xf32> -> vector<8x32xf32>
    %c0_10 = arith.constant 0 : index
    %c0_11 = arith.constant 0 : index
    %8 = vector.load %arg5[%c0_10, %c0_11] : memref<1x32xf32, #tpu.memory_space<vmem>>, vector<1x32xf32>
    %9 = vector.broadcast %8 : vector<1x32xf32> to vector<8x32xf32>
    %10 = arith.addf %7, %9 : vector<8x32xf32>
    %c0_12 = arith.constant 0 : index
    %c0_13 = arith.constant 0 : index
    %11 = vector.load %arg6[%c0_12, %c0_13] : memref<32x32xf32, #tpu.memory_space<vmem>>, vector<32x32xf32>
    %cst_14 = arith.constant dense<0.000000e+00> : vector<1x32xf32>
    %12 = tpu.matmul %3, %11, %cst_14 {dimension_numbers = #tpu.dot_dimension_numbers<[1], [0], [0], [1], [0, 0, 1, 1], [], []>} : vector<1x32xf32>, vector<32x32xf32>, vector<1x32xf32> -> vector<1x32xf32>
    %c0_15 = arith.constant 0 : index
    %c0_16 = arith.constant 0 : index
    %13 = vector.load %arg7[%c0_15, %c0_16] : memref<1x32xf32, #tpu.memory_space<vmem>>, vector<1x32xf32>
    %14 = arith.addf %12, %13 : vector<1x32xf32>
    %15 = vector.broadcast %14 : vector<1x32xf32> to vector<8x32xf32>
    %16 = arith.addf %10, %15 : vector<8x32xf32>
    %17 = math.tanh %16 : vector<8x32xf32>
    %c0_17 = arith.constant 0 : index
    %c0_18 = arith.constant 0 : index
    %18 = vector.load %arg8[%c0_17, %c0_18] : memref<1x32xf32, #tpu.memory_space<vmem>>, vector<1x32xf32>
    %19 = vector.broadcast %18 : vector<1x32xf32> to vector<8x32xf32>
    %20 = arith.mulf %17, %19 : vector<8x32xf32>
    %cst_19 = arith.constant dense<0.000000e+00> : vector<8xf32>
    %21 = vector.multi_reduction <add>, %20, %cst_19 [1] : vector<8x32xf32> to vector<8xf32>
    %22 = vector.shape_cast %21 : vector<8xf32> to vector<8x1xf32>
    %c0_20 = arith.constant 0 : index
    %c0_21 = arith.constant 0 : index
    %23 = vector.load %arg9[%c0_20, %c0_21] : memref<1x1xf32, #tpu.memory_space<vmem>>, vector<1x1xf32>
    %24 = vector.broadcast %23 : vector<1x1xf32> to vector<8x1xf32>
    %25 = arith.addf %22, %24 : vector<8x1xf32>
    %cst_22 = arith.constant dense<0xFF800000> : vector<1xf32>
    %26 = vector.multi_reduction <maximumf>, %25, %cst_22 [0] : vector<8x1xf32> to vector<1xf32>
    %27 = vector.shape_cast %26 : vector<1xf32> to vector<1x1xf32>
    %28 = vector.broadcast %27 : vector<1x1xf32> to vector<8x1xf32>
    %29 = arith.subf %25, %28 : vector<8x1xf32>
    %30 = math.exp %29 : vector<8x1xf32>
    %cst_23 = arith.constant dense<0.000000e+00> : vector<1xf32>
    %31 = vector.multi_reduction <add>, %30, %cst_23 [0] : vector<8x1xf32> to vector<1xf32>
    %32 = vector.shape_cast %31 : vector<1xf32> to vector<1x1xf32>
    %33 = tpu.reciprocal %32 {approx = true} : vector<1x1xf32> -> vector<1x1xf32>
    %34 = vector.broadcast %33 : vector<1x1xf32> to vector<8x1xf32>
    %35 = arith.mulf %30, %34 : vector<8x1xf32>
    %cst_24 = arith.constant dense<0.000000e+00> : vector<1x32xf32>
    %36 = tpu.matmul %35, %1, %cst_24 {dimension_numbers = #tpu.dot_dimension_numbers<[0], [0], [1], [1], [0, 1, 1, 1], [], []>} : vector<8x1xf32>, vector<8x32xf32>, vector<1x32xf32> -> vector<1x32xf32>
    %c0_25 = arith.constant 0 : index
    %c0_26 = arith.constant 0 : index
    %37 = vector.load %arg10[%c0_25, %c0_26] : memref<32x96xf32, #tpu.memory_space<vmem>>, vector<32x96xf32>
    %cst_27 = arith.constant dense<0.000000e+00> : vector<1x96xf32>
    %38 = tpu.matmul %5, %37, %cst_27 {dimension_numbers = #tpu.dot_dimension_numbers<[1], [0], [0], [1], [0, 0, 1, 1], [], []>} : vector<1x32xf32>, vector<32x96xf32>, vector<1x96xf32> -> vector<1x96xf32>
    %c0_28 = arith.constant 0 : index
    %c0_29 = arith.constant 0 : index
    %39 = vector.load %arg11[%c0_28, %c0_29] : memref<32x96xf32, #tpu.memory_space<vmem>>, vector<32x96xf32>
    %cst_30 = arith.constant dense<0.000000e+00> : vector<1x96xf32>
    %40 = tpu.matmul %36, %39, %cst_30 {dimension_numbers = #tpu.dot_dimension_numbers<[1], [0], [0], [1], [0, 0, 1, 1], [], []>} : vector<1x32xf32>, vector<32x96xf32>, vector<1x96xf32> -> vector<1x96xf32>
    %41 = arith.addf %38, %40 : vector<1x96xf32>
    %c0_31 = arith.constant 0 : index
    %c0_32 = arith.constant 0 : index
    %42 = vector.load %arg12[%c0_31, %c0_32] : memref<1x96xf32, #tpu.memory_space<vmem>>, vector<1x96xf32>
    %43 = arith.addf %41, %42 : vector<1x96xf32>
    %c0_33 = arith.constant 0 : index
    %c0_34 = arith.constant 0 : index
    %44 = vector.load %arg13[%c0_33, %c0_34] : memref<32x96xf32, #tpu.memory_space<vmem>>, vector<32x96xf32>
    %cst_35 = arith.constant dense<0.000000e+00> : vector<1x96xf32>
    %45 = tpu.matmul %3, %44, %cst_35 {dimension_numbers = #tpu.dot_dimension_numbers<[1], [0], [0], [1], [0, 0, 1, 1], [], []>} : vector<1x32xf32>, vector<32x96xf32>, vector<1x96xf32> -> vector<1x96xf32>
    %c0_36 = arith.constant 0 : index
    %c0_37 = arith.constant 0 : index
    %46 = vector.load %arg14[%c0_36, %c0_37] : memref<1x96xf32, #tpu.memory_space<vmem>>, vector<1x96xf32>
    %47 = arith.addf %45, %46 : vector<1x96xf32>
    %48 = vector.extract_strided_slice %43 {offsets = [0, 0], sizes = [1, 32], strides = [1, 1]} : vector<1x96xf32> to vector<1x32xf32>
    %49 = vector.extract_strided_slice %43 {offsets = [0, 32], sizes = [1, 32], strides = [1, 1]} : vector<1x96xf32> to vector<1x32xf32>
    %50 = vector.extract_strided_slice %43 {offsets = [0, 64], sizes = [1, 32], strides = [1, 1]} : vector<1x96xf32> to vector<1x32xf32>
    %51 = vector.extract_strided_slice %47 {offsets = [0, 0], sizes = [1, 32], strides = [1, 1]} : vector<1x96xf32> to vector<1x32xf32>
    %52 = vector.extract_strided_slice %47 {offsets = [0, 32], sizes = [1, 32], strides = [1, 1]} : vector<1x96xf32> to vector<1x32xf32>
    %53 = vector.extract_strided_slice %47 {offsets = [0, 64], sizes = [1, 32], strides = [1, 1]} : vector<1x96xf32> to vector<1x32xf32>
    %54 = arith.addf %48, %51 : vector<1x32xf32>
    %55 = arith.negf %54 : vector<1x32xf32>
    %56 = math.exp %55 : vector<1x32xf32>
    %cst_38 = arith.constant 1.000000e+00 : f32
    %57 = vector.broadcast %cst_38 : f32 to vector<1x32xf32>
    %58 = arith.addf %57, %56 : vector<1x32xf32>
    %59 = arith.divf %57, %58 : vector<1x32xf32>
    %60 = arith.addf %49, %52 : vector<1x32xf32>
    %61 = arith.negf %60 : vector<1x32xf32>
    %62 = math.exp %61 : vector<1x32xf32>
    %cst_39 = arith.constant 1.000000e+00 : f32
    %63 = vector.broadcast %cst_39 : f32 to vector<1x32xf32>
    %64 = arith.addf %63, %62 : vector<1x32xf32>
    %65 = arith.divf %63, %64 : vector<1x32xf32>
    %66 = arith.mulf %59, %53 : vector<1x32xf32>
    %67 = arith.addf %50, %66 : vector<1x32xf32>
    %68 = math.tanh %67 : vector<1x32xf32>
    %cst_40 = arith.constant 1.000000e+00 : f32
    %69 = vector.broadcast %cst_40 : f32 to vector<1x32xf32>
    %70 = arith.subf %69, %65 : vector<1x32xf32>
    %71 = arith.mulf %70, %68 : vector<1x32xf32>
    %72 = arith.mulf %65, %3 : vector<1x32xf32>
    %73 = arith.addf %71, %72 : vector<1x32xf32>
    %c0_41 = arith.constant 0 : index
    %c0_42 = arith.constant 0 : index
    %c0_43 = arith.constant 0 : index
    %74 = vector.load %arg18[%c0_41, %c0_42, %c0_43] : memref<1x1x32xf32, #tpu.memory_space<vmem>>, vector<1x1x32xf32>
    %75 = vector.shape_cast %74 : vector<1x1x32xf32> to vector<1x32xf32>
    %76 = vector.shape_cast %73 : vector<1x32xf32> to vector<1x1x32xf32>
    tpu.vector_store %arg18[%c0_41, %c0_42, %c0_43], %76 {strides = array<i32>} : memref<1x1x32xf32, #tpu.memory_space<vmem>>, vector<1x1x32xf32>,
    %c0_44 = arith.constant 0 : index
    %c0_45 = arith.constant 0 : index
    %77 = vector.load %arg15[%c0_44, %c0_45] : memref<32x16xf32, #tpu.memory_space<vmem>>, vector<32x16xf32>
    %cst_46 = arith.constant dense<0.000000e+00> : vector<1x16xf32>
    %78 = tpu.matmul %73, %77, %cst_46 {dimension_numbers = #tpu.dot_dimension_numbers<[1], [0], [0], [1], [0, 0, 1, 1], [], []>} : vector<1x32xf32>, vector<32x16xf32>, vector<1x16xf32> -> vector<1x16xf32>
    %c0_47 = arith.constant 0 : index
    %c0_48 = arith.constant 0 : index
    %79 = vector.load %arg16[%c0_47, %c0_48] : memref<1x16xf32, #tpu.memory_space<vmem>>, vector<1x16xf32>
    %80 = arith.addf %78, %79 : vector<1x16xf32>
    %c0_49 = arith.constant 0 : index
    %c0_50 = arith.constant 0 : index
    %c0_51 = arith.constant 0 : index
    %81 = vector.load %arg17[%c0_49, %c0_50, %c0_51] : memref<1x1x16xf32, #tpu.memory_space<vmem>>, vector<1x1x16xf32>
    %82 = vector.shape_cast %81 : vector<1x1x16xf32> to vector<1x16xf32>
    %83 = vector.shape_cast %80 : vector<1x16xf32> to vector<1x1x16xf32>
    tpu.vector_store %arg17[%c0_49, %c0_50, %c0_51], %83 {strides = array<i32>} : memref<1x1x16xf32, #tpu.memory_space<vmem>>, vector<1x1x16xf32>,
    return
  }
  func.func @transform_0(%arg0: i32) -> (i32, i32, i32) {
    %c0_i32 = arith.constant 0 : i32
    %c0_i32_0 = arith.constant 0 : i32
    %c0_i32_1 = arith.constant 0 : i32
    return %arg0, %c0_i32, %c0_i32_0 : i32, i32, i32
  }
  func.func @transform_1(%arg0: i32) -> (i32, i32, i32) {
    %c0_i32 = arith.constant 0 : i32
    %c0_i32_0 = arith.constant 0 : i32
    %c0_i32_1 = arith.constant 0 : i32
    return %arg0, %c0_i32, %c0_i32_0 : i32, i32, i32
  }
  func.func @transform_2(%arg0: i32) -> (i32, i32, i32) {
    %c0_i32 = arith.constant 0 : i32
    %c0_i32_0 = arith.constant 0 : i32
    %c0_i32_1 = arith.constant 0 : i32
    return %arg0, %c0_i32, %c0_i32_0 : i32, i32, i32
  }
  func.func @transform_3(%arg0: i32) -> (i32, i32) {
    %c0_i32 = arith.constant 0 : i32
    %c0_i32_0 = arith.constant 0 : i32
    %c0_i32_1 = arith.constant 0 : i32
    return %c0_i32, %c0_i32_0 : i32, i32
  }
  func.func @transform_4(%arg0: i32) -> (i32, i32) {
    %c0_i32 = arith.constant 0 : i32
    %c0_i32_0 = arith.constant 0 : i32
    %c0_i32_1 = arith.constant 0 : i32
    return %c0_i32, %c0_i32_0 : i32, i32
  }
  func.func @transform_5(%arg0: i32) -> (i32, i32) {
    %c0_i32 = arith.constant 0 : i32
    %c0_i32_0 = arith.constant 0 : i32
    %c0_i32_1 = arith.constant 0 : i32
    return %c0_i32, %c0_i32_0 : i32, i32
  }
  func.func @transform_6(%arg0: i32) -> (i32, i32) {
    %c0_i32 = arith.constant 0 : i32
    %c0_i32_0 = arith.constant 0 : i32
    %c0_i32_1 = arith.constant 0 : i32
    return %c0_i32, %c0_i32_0 : i32, i32
  }
  func.func @transform_7(%arg0: i32) -> (i32, i32) {
    %c0_i32 = arith.constant 0 : i32
    %c0_i32_0 = arith.constant 0 : i32
    %c0_i32_1 = arith.constant 0 : i32
    return %c0_i32, %c0_i32_0 : i32, i32
  }
  func.func @transform_8(%arg0: i32) -> (i32, i32) {
    %c0_i32 = arith.constant 0 : i32
    %c0_i32_0 = arith.constant 0 : i32
    %c0_i32_1 = arith.constant 0 : i32
    return %c0_i32, %c0_i32_0 : i32, i32
  }
  func.func @transform_9(%arg0: i32) -> (i32, i32) {
    %c0_i32 = arith.constant 0 : i32
    %c0_i32_0 = arith.constant 0 : i32
    %c0_i32_1 = arith.constant 0 : i32
    return %c0_i32, %c0_i32_0 : i32, i32
  }
  func.func @transform_10(%arg0: i32) -> (i32, i32) {
    %c0_i32 = arith.constant 0 : i32
    %c0_i32_0 = arith.constant 0 : i32
    %c0_i32_1 = arith.constant 0 : i32
    return %c0_i32, %c0_i32_0 : i32, i32
  }
  func.func @transform_11(%arg0: i32) -> (i32, i32) {
    %c0_i32 = arith.constant 0 : i32
    %c0_i32_0 = arith.constant 0 : i32
    %c0_i32_1 = arith.constant 0 : i32
    return %c0_i32, %c0_i32_0 : i32, i32
  }
  func.func @transform_12(%arg0: i32) -> (i32, i32) {
    %c0_i32 = arith.constant 0 : i32
    %c0_i32_0 = arith.constant 0 : i32
    %c0_i32_1 = arith.constant 0 : i32
    return %c0_i32, %c0_i32_0 : i32, i32
  }
  func.func @transform_13(%arg0: i32) -> (i32, i32) {
    %c0_i32 = arith.constant 0 : i32
    %c0_i32_0 = arith.constant 0 : i32
    %c0_i32_1 = arith.constant 0 : i32
    return %c0_i32, %c0_i32_0 : i32, i32
  }
  func.func @transform_14(%arg0: i32) -> (i32, i32) {
    %c0_i32 = arith.constant 0 : i32
    %c0_i32_0 = arith.constant 0 : i32
    %c0_i32_1 = arith.constant 0 : i32
    return %c0_i32, %c0_i32_0 : i32, i32
  }
  func.func @transform_15(%arg0: i32) -> (i32, i32) {
    %c0_i32 = arith.constant 0 : i32
    %c0_i32_0 = arith.constant 0 : i32
    %c0_i32_1 = arith.constant 0 : i32
    return %c0_i32, %c0_i32_0 : i32, i32
  }
  func.func @transform_16(%arg0: i32) -> (i32, i32, i32) {
    %c0_i32 = arith.constant 0 : i32
    %c0_i32_0 = arith.constant 0 : i32
    %c0_i32_1 = arith.constant 0 : i32
    return %arg0, %c0_i32, %c0_i32_0 : i32, i32, i32
  }
  func.func @transform_17(%arg0: i32) -> (i32, i32, i32) {
    %c0_i32 = arith.constant 0 : i32
    %c0_i32_0 = arith.constant 0 : i32
    %c0_i32_1 = arith.constant 0 : i32
    return %arg0, %c0_i32, %c0_i32_0 : i32, i32, i32
  }
}

</mosaic_0001>

<bundles_post_ra>
// kernel: tpu_custom_call.1
= control target key start
LH: loop header
LB: loop body
LE: loop exit
PB: predicated region body
PF: predicated region fallthrough
CT: control target
= control target key end

     0   :  { %s2750_s0 = inlined_call_operand.hbm [shape: f32[8,8,32], index: 0, kind: input, shape index: {}]   ;;  %s2751_s1 = inlined_call_operand.hbm [shape: f32[8,1,32], index: 1, kind: input, shape index: {}]   ;;  %s2752_s2 = inlined_call_operand.hbm [shape: f32[8,1,32], index: 2, kind: input, shape index: {}]   ;;  %s2753_s3 = inlined_call_operand.vmem [shape: f32[32,32], index: 3, kind: input, shape index: {}]   ;;  %s2754_s4 = inlined_call_operand.vmem [shape: f32[1,32], index: 4, kind: input, shape index: {}]   ;;  %s2755_s5 = inlined_call_operand.vmem [shape: f32[32,32], index: 5, kind: input, shape index: {}]   ;;  %s2756_s6 = inlined_call_operand.vmem [shape: f32[1,32], index: 6, kind: input, shape index: {}]   ;;  %s2757_s7 = inlined_call_operand.hbm [shape: f32[1,32], index: 7, kind: input, shape index: {}]   ;;  %s2758_s8 = inlined_call_operand.<no memory space> [shape: f32[1,1], index: 8, kind: input, shape index: {}]   ;;  %s2759_s9 = inlined_call_operand.hbm [shape: f32[32,96], index: 9, kind: input, shape index: {}]   ;;  %s2760_s10 = inlined_call_operand.hbm [shape: f32[32,96], index: 10, kind: input, shape index: {}]   ;;  %s2761_s11 = inlined_call_operand.vmem [shape: f32[1,96], index: 11, kind: input, shape index: {}]   ;;  %s2762_s12 = inlined_call_operand.hbm [shape: f32[32,96], index: 12, kind: input, shape index: {}]   ;;  %s2763_s13 = inlined_call_operand.vmem [shape: f32[1,96], index: 13, kind: input, shape index: {}]   ;;  %s2764_s14 = inlined_call_operand.vmem [shape: f32[32,16], index: 14, kind: input, shape index: {}]   ;;  %s2765_s15 = inlined_call_operand.vmem [shape: f32[1,16], index: 15, kind: input, shape index: {}]   ;;  %s2766_s16 = inlined_call_operand.hbm [shape: f32[8,1,16], index: 16, kind: output, shape index: {0}]   ;;  %s2767_s17 = inlined_call_operand.hbm [shape: f32[8,1,32], index: 17, kind: output, shape index: {1}]  }
   0x1   :  { %2795 = sst [smem:[#allocation30_spill]] %s2750_s0  ;;  %v23_v0 = vstv %s2758_s8 }
   0x2   :  { %2796 = sst [smem:[#allocation31_spill]] %s2751_s1  ;;  %24 = vst [vmem:[#allocation2] sm:$0x1] %v23_v0 }
   0x3   :  { %2797 = sst [smem:[#allocation32_spill]] %s2754_s4 }
   0x4   :  { %2798 = sst [smem:[#allocation33_spill]] %s2757_s7 }
   0x5   :  { %2799 = sst [smem:[#allocation34_spill]] %s2760_s10 }
   0x6   :  { %2800 = sst [smem:[#allocation35_spill]] %s2761_s11 }
   0x7   :  { %2801 = sst [smem:[#allocation36_spill]] %s2763_s13 }
   0x8   :  { %2802 = sst [smem:[#allocation37_spill]] %s2764_s14 }
   0x9   :  { %2803 = sst [smem:[#allocation38_spill]] %s2765_s15 }
   0xa   :  { %2804 = sst [smem:[#allocation39_spill]] %s2766_s16 }
   0xb   :  { %2805 = sst [smem:[#allocation40_spill]] %s2767_s17 }
   0xc   :  { %25 = vsyncpa [#allocation4], 0 }
   0xd   :  { %27 = vsyncpa [#allocation4 + $0x1], 0 }
   0xe   :  { %28 = vsyncpa [#allocation7], 0 }
   0xf   :  { %30 = vsyncpa [#allocation7 + $0x1], 0 }
  0x10   :  { %31 = vsyncpa [#allocation10], 0 }
  0x11   :  { %32 = vsyncpa [#allocation13], 0 }
  0x12   :  { %33 = vsyncpa [#allocation5], 0 }
  0x13   :  { %35 = vsyncpa [#allocation5 + $0x1], 0 }
  0x14   :  { %36 = vsyncpa [#allocation17], 0 }
  0x15   :  { %38 = vsyncpa [#allocation17 + $0x1], 0  ;;  %s2278_s26 = smov 0   ;;  %s2280_s27 = smov 0  }
  0x16   :  { %s2282_s28 = smov 0   ;;  %s2284_s29 = smov 0  }
  0x17 LB: > { %2806 = sst [smem:[#allocation24_spill]] %s2154_s26  ;;  %s2168_s8 = smov [#allocation9]   ;;  %s2166_s29 = sphi %s2284_s29, %s2849_s29   ;;  %s2162_s28 = sphi %s2282_s28, %s2851_s28   ;;  %s2158_s27 = sphi %s2280_s27, %s2853_s27   ;;  %s2154_s26 = sphi %s2278_s26, %s2852_s26  }
  0x18   : > { %2807 = sst [smem:[#allocation25_spill]] %s2162_s28  ;;  %s477_s0 = sshll.u32 %s2168_s8, 4  ;;  %s478_s0 = int_to_ptr.vmem [resolvable:$true] %s477_s0 }
  0x19   : > { %s2299_s30 = sadd.s32 4294967295, %s2166_s29   ;;  %p1562_p0 = scmp.ge.s32.totalorder %s2166_s29, 1 }
  0x1a   : > { %p2771_p1 = scmp.eq.s32.totalorder %s2299_s30, 0  ;;  %p452_p2 = scmp.lt.s32.totalorder %s2166_s29, 9 }
  0x1b   : > { %s2169_s19 = smov [#allocation12]   ;;  %s2810_s7 = sld [smem:[#allocation33_spill]] }
  0x1c   : > { %p2304_p3 = pnand %p1562_p0, %p452_p2  ;;  %s503_s1 = sshll.u32 %s2169_s19, 4  ;;  %s2316_s1 = int_to_ptr.vmem [resolvable:$true] %s503_s1 }
  0x1e   : > { %s2808_s18 = scalar_select %p2304_p3, 1, 0 }
  0x1f   : > { %p1758_p4 = pneg %p2304_p3 }
  0x21   : > { %p2312_p5 = pnand %p1758_p4, %p2771_p1  ;;  %s1854_s23 = scalar_lea.hbm %s2810_s7, 16 }
  0x22   : > { %p1855_p6 = scmp.ne.s32.totalorder %s2810_s7, %s1854_s23  ;;  %p1861_p10 = scmp.lt.u32.totalorder %s1854_s23, %s2810_s7 }
  0x23   : > { %s2809_s20 = scalar_select %p2312_p5, 1, 0 }
  0x24   : > { %p2326_p7 = pneg %p2312_p5 }
  0x26   : > { %s2811_s8 = scalar_select %p2326_p7, 1, 0 }
  0x27   : > { %p1857_p8 = pnand %p2326_p7, %p1855_p6 }
  0x29   : > { %p1858_p9 = pneg %p1857_p8 }
  0x2b   : > { %p1863_p11 = pnand %p1861_p10, %p1858_p9 }
  0x2d   : > { %1866 = shalt.err (!%p1863_p11)
}
  0x2e   : > { %s1867_s21 = scalar_lea.vmem %s478_s0, 16  ;;  %s1874_s22 = scalar_lea.vmem %s478_s0, 32 }
  0x2f   : > { %p1868_p12 = scmp.ne.s32.totalorder %s478_s0, %s1867_s21  ;;  %p1875_p2 = scmp.lt.s32.totalorder %s478_s0, %s478_s0 }
  0x30   : > { %p1876_p4 = scmp.lt.s32.totalorder %s1874_s22, %s1867_s21 }
  0x31   : > { %p1870_p13 = pnand %p1868_p12, %p2326_p7 }
  0x32   : > { %p1877_p1 = por %p1876_p4, %p1875_p2 }
  0x33   : > { %p1871_p0 = pneg %p1870_p13 }
  0x35   : > { %p1878_p3 = pnand %p1877_p1, %p1871_p0 }
  0x37   : > { %1881 = shalt.err (!%p1878_p3)
}
  0x38   : > { %1761 = dma.hbm_to_vmem [thread:$0]  (!%p2312_p5), %s2810_s7, 16, %s478_s0, [#allocation10]  }
  0x39   : > { %s2812_s10 = sld [smem:[#allocation34_spill]] }
  0x3f   : > { %s1882_s19 = scalar_lea.hbm %s2812_s10, 512 }
  0x40   : > { %p1883_p6 = scmp.ne.s32.totalorder %s2812_s10, %s1882_s19  ;;  %p1889_p1 = scmp.lt.u32.totalorder %s1882_s19, %s2812_s10 }
  0x42   : > { %p1885_p8 = pnand %p1883_p6, %p2326_p7 }
  0x44   : > { %p1886_p9 = pneg %p1885_p8 }
  0x46   : > { %p1891_p3 = pnand %p1889_p1, %p1886_p9 }
  0x48   : > { %1894 = shalt.err (!%p1891_p3)
}
  0x49   : > { %s1895_s0 = scalar_lea.vmem %s2316_s1, 512  ;;  %p1903_p13 = scmp.lt.s32.totalorder %s2316_s1, %s2316_s1 }
  0x4a   : > { %p1896_p10 = scmp.ne.s32.totalorder %s2316_s1, %s1895_s0  ;;  %p1904_p0 = scmp.lt.s32.totalorder %s1895_s0, %s1895_s0 }
  0x4c   : > { %p1898_p11 = pnand %p1896_p10, %p2326_p7  ;;  %p1905_p2 = por %p1904_p0, %p1903_p13 }
  0x4e   : > { %p1899_p12 = pneg %p1898_p11 }
  0x50   : > { %p1906_p4 = pnand %p1905_p2, %p1899_p12 }
  0x52   : > { %1909 = shalt.err (!%p1906_p4)
}
  0x53   : > { %s2774_s15 = smov 128   ;;  %s2776_s17 = smov 8  }
  0x54   : > { %1767 = dma.hbm_to_vmem [thread:$0]  (!%p2312_p5), %s2812_s10, 512, %s2316_s1, [#allocation13], %s2774_s15, %s2774_s15, %s2776_s17  }
  0x55   : > { %s1561_s16 = sadd.s32 4294967294, %s2166_s29   ;;  %s2370_s23 = sadd.s32 1, %s2166_s29  }
  0x56   : > { %2813 = sst [smem:[#allocation26_spill]] %s2370_s23  ;;  %s48_s19 = ssub.s32 %s2166_s29, %s2370_s23 }
  0x57   : > { %s51_s21 = sadd.s32 1, %s2162_s28  ;;  %p49_p6 = scmp.eq.s32.totalorder %s48_s19, 0 }
  0x58   : > { %p58_p8 = scmp.ne.s32.totalorder %s2162_s28, %s2158_s27  ;;  %p59_p9 = scmp.eq.s32.totalorder %s2166_s29, 0 }
  0x59   : > { %p64_p1 = scmp.ne.s32.totalorder %s2158_s27, %s2154_s26  ;;  %p2815_p10 = scmp.eq.s32.totalorder %s2299_s30, 0 }
  0x5a   : > { %s2381_s22 = scalar_select %p49_p6, %s2162_s28, %s51_s21  }
  0x5b   : > { %p60_p3 = por %p59_p9, %p58_p8  ;;  %p2385_p11 = por %p2815_p10, %p64_p1 }
  0x5c   : > { %2814 = sst [smem:[#allocation27_spill]] %s2381_s22  ;;  %p413_p12 = scmp.eq.s32.totalorder %s2299_s30, 7 }
  0x5d   : > { %s2816_s0 = scalar_select %p2385_p11, 1, 0 }
  0x5e   : > { %p419_p13 = scmp.eq.s32.totalorder %s1561_s16, 7  ;;  %p1792_p0 = scmp.lt.s32.totalorder %s2166_s29, 8 }
  0x5f   : > { %s2392_s1 = sand.u32 1, %s2162_s28   ;;  %p2394_p2 = por %p413_p12, %p58_p8 }
  0x60   : > { %p2398_p4 = por %p419_p13, %p64_p1  ;;  %p2402_p6 = pnand %p1792_p0, %p60_p3 }
  0x61   : > { %s2817_s24 = scalar_select %p2394_p2, 1, 0 }
  0x62   : > { %s2819_s25 = scalar_select %p2398_p4, 1, 0 }
  0x63   : > { %2818 = sst [smem:[#allocation28_spill]] %s2817_s24  ;;  %s560_s21 = sand.u32 1, %s2166_s29  }
  0x64   : > { %2820 = sst [smem:[#allocation29_spill]] %s2819_s25  ;;  %s1570_s15 = sshll.u32 %s2166_s29, 4 }
  0x65   : > { %s2821_s19 = scalar_select %p2402_p6, 1, 0 }
  0x66   : > { %s2822_s7 = sld [smem:[#allocation31_spill]]  ;;  %s563_s22 = scalar_lea.vmem [#allocation6], %s2392_s1 }
  0x67   : > { %s570_s28 = sshll.u32 %s563_s22, 4  ;;  %s2419_s26 = scalar_lea.hbm %s2752_s2, %s1570_s15  ;;  %s2414_s28 = int_to_ptr.vmem [resolvable:$true] %s570_s28 }
  0x68   : > { %s2421_s24 = scalar_lea.sflag [#allocation7], %s560_s21  ;;  %p2427_p9 = pneg %p2402_p6 }
  0x6c   : > { %s2411_s10 = scalar_lea.hbm %s2822_s7, %s1570_s15  ;;  %s1915_s11 = scalar_lea.hbm %s2822_s7, 128 }
  0x6d   : > { %s1910_s14 = scalar_lea.hbm %s2411_s10, 16  ;;  %p1916_p10 = scmp.lt.u32.totalorder %s2411_s10, %s2822_s7 }
  0x6e   : > { %p1911_p8 = scmp.ne.s32.totalorder %s2411_s10, %s1910_s14  ;;  %p1917_p12 = scmp.lt.u32.totalorder %s1915_s11, %s1910_s14 }
  0x6f   : > { %p1919_p0 = scmp.lt.u32.totalorder %s1910_s14, %s2411_s10 }
  0x70   : > { %p1913_p1 = pnand %p2427_p9, %p1911_p8  ;;  %p1918_p13 = por %p1917_p12, %p1916_p10 }
  0x72   : > { %p1914_p3 = pneg %p1913_p1  ;;  %p1920_p4 = por %p1919_p0, %p1918_p13 }
  0x74   : > { %p1921_p2 = pnand %p1920_p4, %p1914_p3 }
  0x76   : > { %1924 = shalt.err (!%p1921_p2)
}
  0x77   : > { %s1925_s25 = scalar_lea.vmem %s2414_s28, 16  ;;  %s2172_s21 = smov [#allocation6]  }
  0x78   : > { %p1926_p8 = scmp.ne.s32.totalorder %s2414_s28, %s1925_s25  ;;  %s1930_s22 = sshll.u32 %s2172_s21, 4  ;;  %s1931_s22 = int_to_ptr.vmem [resolvable:$false] %s1930_s22 }
  0x79   : > { %s1932_s16 = scalar_lea.vmem %s1931_s22, 32  ;;  %p1933_p5 = scmp.lt.s32.totalorder %s2414_s28, %s1931_s22 }
  0x7a   : > { %p1928_p1 = pnand %p1926_p8, %p2427_p9  ;;  %p1934_p7 = scmp.lt.s32.totalorder %s1932_s16, %s1925_s25 }
  0x7c   : > { %p1929_p11 = pneg %p1928_p1  ;;  %p1935_p10 = por %p1934_p7, %p1933_p5 }
  0x7e   : > { %p1936_p12 = pnand %p1935_p10, %p1929_p11 }
  0x80   : > { %1939 = shalt.err (!%p1936_p12)
}
  0x81   : > { %1777 = dma.hbm_to_vmem [thread:$0]  (!%p2402_p6), %s2411_s10, 16, %s2414_s28, %s2421_s24  }
  0x82   : > { %s2173_s11 = smov [#allocation11]   ;;  %s2174_s23 = smov [#allocation14]  }
  0x83   : > { %s490_s14 = sshll.u32 %s2173_s11, 4  ;;  %s519_s15 = sshll.u32 %s2174_s23, 4  ;;  %s491_s14 = int_to_ptr.vmem [resolvable:$true] %s490_s14  ;;  %s2451_s15 = int_to_ptr.vmem [resolvable:$true] %s519_s15 }
  0x84   : > { %s1940_s25 = scalar_lea.hbm %s2759_s9, 512  ;;  %p2824_p7 = scmp.ne.s32.totalorder %s2811_s8, 0 }
  0x85   : > { %p1941_p5 = scmp.ne.s32.totalorder %s2759_s9, %s1940_s25  ;;  %p1947_p4 = scmp.lt.u32.totalorder %s1940_s25, %s2759_s9 }
  0x87   : > { %p1943_p11 = pnand %p1941_p5, %p2824_p7 }
  0x89   : > { %p1944_p2 = pneg %p1943_p11 }
  0x8b   : > { %p1949_p3 = pnand %p1947_p4, %p1944_p2 }
  0x8d   : > { %1952 = shalt.err (!%p1949_p3)
}
  0x8e   : > { %s1953_s28 = scalar_lea.vmem %s491_s14, 512  ;;  %p1961_p1 = scmp.lt.s32.totalorder %s491_s14, %s491_s14 }
  0x8f   : > { %p1954_p13 = scmp.ne.s32.totalorder %s491_s14, %s1953_s28  ;;  %p1962_p10 = scmp.lt.s32.totalorder %s1953_s28, %s1953_s28 }
  0x91   : > { %p1956_p0 = pnand %p1954_p13, %p2824_p7  ;;  %p1963_p12 = por %p1962_p10, %p1961_p1 }
  0x93   : > { %p1957_p8 = pneg %p1956_p0 }
  0x95   : > { %p1964_p6 = pnand %p1963_p12, %p1957_p8 }
  0x97   : > { %1967 = shalt.err (!%p1964_p6)
}
  0x98   : > { %p2825_p5 = scmp.ne.s32.totalorder %s2809_s20, 0  ;;  %s2826_s7 = smov 8  }
  0x99   : > { %s2827_s11 = smov 128   ;;  %s1968_s25 = scalar_lea.hbm %s2762_s12, 512 }
  0x9a   : > { %1764 = dma.hbm_to_vmem [thread:$0]  (!%p2825_p5), %s2759_s9, 512, %s491_s14, [#allocation10], %s2827_s11, %s2827_s11, %s2826_s7  }
  0x9b   : > { %p1969_p11 = scmp.ne.s32.totalorder %s2762_s12, %s1968_s25  ;;  %p1975_p4 = scmp.lt.u32.totalorder %s1968_s25, %s2762_s12 }
  0x9d   : > { %p1971_p6 = pnand %p1969_p11, %p2824_p7 }
  0x9f   : > { %p1972_p2 = pneg %p1971_p6 }
  0xa1   : > { %p1977_p3 = pnand %p1975_p4, %p1972_p2 }
  0xa3   : > { %1980 = shalt.err (!%p1977_p3)
}
  0xa4   : > { %s1981_s14 = scalar_lea.vmem %s2451_s15, 512  ;;  %p1989_p1 = scmp.lt.s32.totalorder %s2451_s15, %s2451_s15 }
  0xa5   : > { %p1982_p13 = scmp.ne.s32.totalorder %s2451_s15, %s1981_s14  ;;  %p1990_p10 = scmp.lt.s32.totalorder %s1981_s14, %s1981_s14 }
  0xa7   : > { %p1984_p0 = pnand %p1982_p13, %p2824_p7  ;;  %p1991_p12 = por %p1990_p10, %p1989_p1 }
  0xa9   : > { %p1985_p8 = pneg %p1984_p0 }
  0xab   : > { %p1992_p11 = pnand %p1991_p12, %p1985_p8 }
  0xad   : > { %1995 = shalt.err (!%p1992_p11)
}
  0xae   : > { %1770 = dma.hbm_to_vmem [thread:$0]  (!%p2825_p5), %s2762_s12, 512, %s2451_s15, [#allocation13], %s2827_s11, %s2827_s11, %s2826_s7  }
  0xaf   : > { %s1568_s8 = sshll.u32 %s2392_s1, 3  ;;  %s1569_s23 = sshll.u32 %s2166_s29, 7 }
  0xb0   : > { %s2828_s25 = sld [smem:[#allocation30_spill]]  ;;  %s546_s20 = scalar_lea.vmem [#allocation3], %s1568_s8 }
  0xb1   : > { %s553_s10 = sshll.u32 %s546_s20, 4  ;;  %s543_s28 = scalar_lea.sflag [#allocation4], %s2392_s1  ;;  %s554_s10 = int_to_ptr.vmem [resolvable:$true] %s553_s10 }
  0xb6   : > { %s2505_s16 = scalar_lea.hbm %s2828_s25, %s1569_s23  ;;  %s2001_s11 = scalar_lea.hbm %s2828_s25, 1024 }
  0xb7   : > { %s1996_s14 = scalar_lea.hbm %s2505_s16, 128  ;;  %p2002_p2 = scmp.lt.u32.totalorder %s2505_s16, %s2828_s25 }
  0xb8   : > { %p1997_p7 = scmp.ne.s32.totalorder %s2505_s16, %s1996_s14  ;;  %p2003_p4 = scmp.lt.u32.totalorder %s2001_s11, %s1996_s14 }
  0xb9   : > { %p2005_p13 = scmp.lt.u32.totalorder %s1996_s14, %s2505_s16 }
  0xba   : > { %p1999_p6 = pnand %p1997_p7, %p2427_p9  ;;  %p2004_p3 = por %p2003_p4, %p2002_p2 }
  0xbc   : > { %p2000_p5 = pneg %p1999_p6  ;;  %p2006_p0 = por %p2005_p13, %p2004_p3 }
  0xbe   : > { %p2007_p8 = pnand %p2006_p0, %p2000_p5 }
  0xc0   : > { %2010 = shalt.err (!%p2007_p8)
}
  0xc1   : > { %s2011_s8 = scalar_lea.vmem %s554_s10, 128  ;;  %s2175_s23 = smov [#allocation3]  }
  0xc2   : > { %p2012_p1 = scmp.ne.s32.totalorder %s554_s10, %s2011_s8  ;;  %s2016_s21 = sshll.u32 %s2175_s23, 4  ;;  %s2017_s21 = int_to_ptr.vmem [resolvable:$false] %s2016_s21 }
  0xc3   : > { %s2018_s22 = scalar_lea.vmem %s2017_s21, 256  ;;  %p2019_p11 = scmp.lt.s32.totalorder %s554_s10, %s2017_s21 }
  0xc4   : > { %p2014_p10 = pnand %p2012_p1, %p2427_p9  ;;  %p2020_p7 = scmp.lt.s32.totalorder %s2018_s22, %s2011_s8 }
  0xc6   : > { %p2015_p12 = pneg %p2014_p10  ;;  %p2021_p6 = por %p2020_p7, %p2019_p11 }
  0xc8   : > { %p2022_p2 = pnand %p2021_p6, %p2015_p12 }
  0xca   : > { %2025 = shalt.err (!%p2022_p2)
}
  0xcb   : > { %p2829_p4 = scmp.ne.s32.totalorder %s2821_s19, 0  ;;  %s580_s20 = scalar_lea.vmem [#allocation8], %s2392_s1 }
  0xcc   : > { %s587_s14 = sshll.u32 %s580_s20, 4  ;;  %s2026_s15 = scalar_lea.hbm %s2419_s26, 16  ;;  %s588_s14 = int_to_ptr.vmem [resolvable:$true] %s587_s14 }
  0xcd   : > { %1774 = dma.hbm_to_vmem [thread:$0]  (!%p2829_p4), %s2505_s16, 128, %s554_s10, %s543_s28  }
  0xce   : > { %p2027_p5 = scmp.ne.s32.totalorder %s2419_s26, %s2026_s15  ;;  %s2031_s4 = scalar_lea.hbm %s2752_s2, 128 }
  0xcf   : > { %p2032_p0 = scmp.lt.u32.totalorder %s2419_s26, %s2752_s2  ;;  %p2033_p8 = scmp.lt.u32.totalorder %s2031_s4, %s2026_s15 }
  0xd0   : > { %p2029_p3 = pnand %p2027_p5, %p2427_p9  ;;  %p2035_p10 = scmp.lt.u32.totalorder %s2026_s15, %s2419_s26 }
  0xd1   : > { %p2034_p1 = por %p2033_p8, %p2032_p0 }
  0xd2   : > { %p2030_p13 = pneg %p2029_p3 }
  0xd3   : > { %p2036_p12 = por %p2035_p10, %p2034_p1 }
  0xd5   : > { %p2037_p11 = pnand %p2036_p12, %p2030_p13 }
  0xd7   : > { %2040 = shalt.err (!%p2037_p11)
}
  0xd8   : > { %s2041_s1 = scalar_lea.vmem %s588_s14, 16  ;;  %s2176_s16 = smov [#allocation8]  }
  0xd9   : > { %p2042_p7 = scmp.ne.s32.totalorder %s588_s14, %s2041_s1  ;;  %s2046_s10 = sshll.u32 %s2176_s16, 4  ;;  %s2047_s10 = int_to_ptr.vmem [resolvable:$false] %s2046_s10 }
  0xda   : > { %s2048_s28 = scalar_lea.vmem %s2047_s10, 32  ;;  %p2049_p5 = scmp.lt.s32.totalorder %s588_s14, %s2047_s10 }
  0xdb   : > { %p2044_p6 = pnand %p2042_p7, %p2427_p9  ;;  %p2050_p3 = scmp.lt.s32.totalorder %s2048_s28, %s2041_s1 }
  0xdd   : > { %p2045_p2 = pneg %p2044_p6  ;;  %p2051_p4 = por %p2050_p3, %p2049_p5 }
  0xdf   : > { %p2052_p0 = pnand %p2051_p4, %p2045_p2 }
  0xe1   : > { %2055 = shalt.err (!%p2052_p0)
}
  0xe2   : > { %p2830_p8 = scmp.ne.s32.totalorder %s2821_s19, 0  ;;  %p2831_p13 = scmp.ne.s32.totalorder %s2808_s18, 0 }
  0xe3   : > { %s2547_s17 = sand.u32 (!%p2831_p13), 1, %s2158_s27   ;;  %p2832_p9 = scmp.ne.s32.totalorder (!%p2831_p13), %s2816_s0, 0 }
  0xe4   : > { %1780 = dma.hbm_to_vmem [thread:$0]  (!%p2830_p8), %s2419_s26, 16, %s588_s14, %s2421_s24  }
  0xe5   : > { %596 = sbr.rel (%p2831_p13) target bundleno = 1962 (0x7aa), region = 84  ;;  %s1573_s23 = sshll.u32 (!%p2831_p13), %s2547_s17, 3 }
  0xe6   : > { %s599_s21 = scalar_lea.sflag (!%p2831_p13), [#allocation4], %s2547_s17  ;;  %s2551_s22 = scalar_lea.vmem (!%p2831_p13), [#allocation3], %s1573_s23 }
  0xec   : > { %2129 = dma.done.wait (%p2832_p9), %s599_s21, 128  }
  0xed   : > { %2131 = vsyncadd (%p2832_p9), %s599_s21, 4294967168  ;;  %s607_s26 = sand.u32 1, %s2299_s30   ;;  %s610_s24 = scalar_lea.vmem [#allocation6], %s2547_s17 }
  0xee   : > { %s608_s18 = scalar_lea.sflag [#allocation7], %s607_s26 }
  0xef   : > { %2133 = dma.done.wait (%p2832_p9), %s608_s18, 32  }
  0xf0   : > { %2135 = vsyncadd (%p2832_p9), %s608_s18, 4294967264  ;;  %s618_s19 = scalar_lea.vmem [#allocation8], %s2547_s17  ;;  %p2833_p4 = scmp.eq.s32.totalorder %s2299_s30, 0 }
  0xf2   : > { %2137 = dma.done.wait (%p2833_p4), [#allocation10], 528   ;;  %p2834_p1 = pmov %p2833_p4 }
  0xf4   : > { %2139 = vsyncadd (%p2834_p1), [#allocation10], 4294966768  ;;  %p2835_p10 = pmov %p2834_p1 }
  0xf5   : > { %p2836_p12 = pmov %p2834_p1 }
  0xf6   : > { %2141 = dma.done.wait (%p2835_p10), [#allocation13], 1024  }
  0xf7   : > { %2143 = vsyncadd (%p2836_p12), [#allocation13], 4294966272  ;;  %v2177_v1 = vmov 0.0|0.0   ;;  %vm2178_vm0 = vmmov 0   ;;  %v2179_v2 = vmov 0.0   ;;  %v784_v3 = vld [vmem:[%s2755_s5] sm:$0xff]  ;;  %v862_v17 = vlaneseq }
  0xf8   : > { %1702 = vmatprep.subr.bf16.mxu1 %v2177_v1  ;;  %1696 = vmatprep.subr.bf16.mxu0 %v2177_v1  ;;  %v785_v4 = vld [vmem:[%s2755_s5 + $0x8] sm:$0xff]  ;;  %v699_v5 = vld [vmem:[%s2753_s3] sm:$0xff]  ;;  %v786_v8 = vld [vmem:[%s2755_s5 + $0x10] sm:$0xff]  ;;  %vm710_vm1 = vcmask 261120   ;;  %s2837_s20 = sld [smem:[#allocation32_spill]]  ;;  %vm887_vm2 = vcmask 7168  }
  0xf9   : > { %1644 = vmatprep.mubr.msk.f32.mxu1 %vm2178_vm0, %v2179_v2  ;;  %1633 = vmatprep.mubr.msk.f32.mxu0 %vm2178_vm0, %v2179_v2  ;;  %v1703_v6 = vpack.c.bf16 %v785_v4, %v784_v3  ;;  %v700_v7 = vld [vmem:[%s2753_s3 + $0x8] sm:$0xff]  ;;  %v787_v9 = vld [vmem:[%s2755_s5 + $0x18] sm:$0xff]  ;;  %v701_v11 = vld [vmem:[%s2753_s3 + $0x10] sm:$0xff]  ;;  %v2619_v18 = vshrl.u32 %v862_v17, 7  ;;  %vm939_vm3 = vcmask 64512   ;;  %s2838_s15 = sld [smem:[#allocation36_spill]] }
  0xfa   : > { %v1697_v10 = vpack.c.bf16 %v700_v7, %v699_v5  ;;  %v702_v12 = vld [vmem:[%s2753_s3 + $0x18] sm:$0xff]  ;;  %v1706_v13 = vpack.c.bf16 %v787_v9, %v786_v8  ;;  %v2606_v15 = vld [vmem:[%s610_s24] sm:$0x1]  ;;  %v696_v16 = vld [vmem:[%s2551_s22] sm:$0xff]  ;;  %s2180_s7 = smov 64   ;;  %s2839_s13 = sld [smem:[#allocation35_spill]] }
  0xfb   : > { %1704 = vmatpush3.bf16.msra.mxu1 %v1703_v6  ;;  %v1700_v14 = vpack.c.bf16 %v702_v12, %v701_v11  ;;  %v788_v19 = vld [vmem:[%s2756_s6] sm:$0x1]  ;;  %v864_v20 = vsub.s32 0, %v2619_v18  ;;  %v1581_v30 = vld [vmem:[#allocation9] ss:$0 sm:$0xff]  ;;  %v1017_v56 = vld [vmem:[#allocation12] sm:$0xff] }
  0xfc   : > { %1698 = vmatpush3.bf16.msra.mxu0 %v1697_v10  ;;  %1705 = vmatprep.subr.bf16.mxu1 %v2177_v1  ;;  %v1582_v34 = vld [vmem:[#allocation2] ss:$0 sm:$0xff]  ;;  %v1019_v59 = vld [vmem:[#allocation12 + $0x10] sm:$0xff]  ;;  %v1020_v60 = vld [vmem:[#allocation12 + $0x18] sm:$0xff]  ;;  %s2840_s16 = sld [smem:[#allocation37_spill]]  ;;  %s2181_s18 = smov 96  }
  0xfd   : > { %1699 = vmatprep.subr.bf16.mxu0 %v2177_v1  ;;  %v1018_v57 = vld [vmem:[#allocation12 + $0x8] sm:$0xff]  ;;  %v1712_v61 = vpack.c.bf16 %v1020_v60, %v1019_v59  ;;  %v1013_v62 = vld [vmem:[#allocation11] sm:$0xff]  ;;  %v1015_v3 = vld [vmem:[#allocation11 + $0x10] sm:$0xff]  ;;  %s2182_s24 = smov 32   ;;  %s2841_s0 = sld [smem:[#allocation28_spill]]  ;;  %vm1281_vm4 = vcmask 253952  }
  0xfe   : > { %v1578_v21 = vld [vmem:[%s2837_s20] ss:$0 sm:$0xff]  ;;  %v1709_v58 = vpack.c.bf16 %v1018_v57, %v1017_v56  ;;  %v1016_v4 = vld [vmem:[#allocation11 + $0x18] sm:$0xff]  ;;  %v1169_v8 = vld [vmem:[#allocation14] sm:$0xff]  ;;  %s695_s20 = scalar_lea.vmem [#allocation16], %s2547_s17  ;;  %s2183_s1 = smov [#allocation16]  }
  0xff   : > { %1707 = vmatpush3.bf16.msra.mxu1 %v1706_v13  ;;  %v1014_v63 = vld [vmem:[#allocation11 + $0x8] sm:$0xff]  ;;  %v1718_v6 = vpack.c.bf16 %v1016_v4, %v1015_v3  ;;  %v1171_v11 = vld [vmem:[#allocation14 + $0x10] sm:$0xff]  ;;  %v1172_v12 = vld [vmem:[#allocation14 + $0x18] sm:$0xff]  ;;  %s1392_s4 = sshll.u32 %s695_s20, 4  ;;  %s2060_s10 = sshll.u32 %s2183_s1, 4  ;;  %s1393_s4 = int_to_ptr.vmem [resolvable:$true] %s1392_s4  ;;  %s2061_s10 = int_to_ptr.vmem [resolvable:$false] %s2060_s10 }
 0x100   : > { %1701 = vmatpush3.bf16.msra.mxu0 %v1700_v14  ;;  %1708 = vmatprep.subr.bf16.mxu1 %v2177_v1  ;;  %v1715_v0 = vpack.c.bf16 %v1014_v63, %v1013_v62  ;;  %v698_v7 = vld [vmem:[%s618_s19] sm:$0x1]  ;;  %s1589_s19 = sshll.u32 %s2299_s30, 4  ;;  %s2056_s8 = scalar_lea.vmem %s1393_s4, 16 }
 0x101   : > { %1647 = vmatprep.subr.mxu0 %v2179_v2  ;;  %v1170_v9 = vld [vmem:[#allocation14 + $0x8] sm:$0xff]  ;;  %p2057_p11 = scmp.ne.s32.totalorder %s1393_s4, %s2056_s8  ;;  %s2062_s28 = scalar_lea.vmem %s2061_s10, 32 }
 0x102   : > { %1645 = vmatmul.mubr.msk.f32.vlgmr.msra.gmra.mrb[0].mxu1 %vm710_vm1, %v2606_v15  ;;  %v1721_v10 = vpack.c.bf16 %v1170_v9, %v1169_v8  ;;  %p2063_p5 = scmp.lt.s32.totalorder %s1393_s4, %s2061_s10  ;;  %p2064_p3 = scmp.lt.s32.totalorder %s2062_s28, %s2056_s8 }
 0x103   : > { %1634 = vmatmul.mubr.msk.f32.vlgmr.msra.gmra.mrb[0].mxu0 %vm710_vm1, %v696_v16  ;;  %1660 = vmatprep.mubr.msk.f32.mxu1 %vm2178_vm0, %v2179_v2  ;;  %p2843_p7 = scmp.ne.s32.totalorder %s2841_s0, 0 }
 0x104   : > { %1648 = vmatpush3.msra.mxu0 %v696_v16  ;;  %1649 = vmatprep.mubr.msk.f32.mxu0 %vm2178_vm0, %v2179_v2  ;;  %v1724_v16 = vpack.c.bf16 %v1172_v12, %v1171_v11  ;;  %p2065_p0 = por %p2064_p3, %p2063_p5 }
 0x105   : > { %1714 = vmatprep.subr.bf16.mxu0 %v2177_v1  ;;  %1710 = vmatpush3.bf16.msra.mxu1 %v1709_v58  ;;  %p2058_p6 = pnand %p2057_p11, %p2843_p7 }
 0x106   : > { %1711 = vmatprep.subr.bf16.mxu1 %v2177_v1 }
 0x107   : > { %p2059_p2 = pneg %p2058_p6 }
 0x109   : > { %1713 = vmatpush3.bf16.msra.mxu1 %v1712_v61  ;;  %p2066_p8 = pnand %p2065_p0, %p2059_p2 }
 0x10a   : > { %1720 = vmatprep.subr.bf16.mxu1 %v2177_v1 }
 0x1d5   : > { %v858_v22 = vpop.f32.mrb[0].mxu1 }
 0x1d6   : > { %v859_v23 = vadd.f32 %v858_v22, %v788_v19  ;;  %v780_v24 = vpop.f32.mrb[0].mxu0  ;;  %v1646_v25 = vpop.f32.mrb[1].mxu1 }
 0x1d7   : > { %v781_v26 = vadd.f32 %v1578_v21, %v780_v24  ;;  %v1635_v27 = vpop.f32.mrb[1].mxu0  ;;  %v1173_v24 = vld [vmem:[%s2838_s15] sm:$0x1] }
 0x1d8   : > { %v865_v28 = vrot.slane %v859_v23, %v864_v20 }
 0x1da   : > { %v866_v29 = vadd.f32 %v865_v28, %v781_v26 }
 0x1dc   : > { %1842 = vtanh.f32 %v866_v29 }
 0x1e6   : > { %v1843_v31 = vpop.eup %1842 }
 0x1e7   : > { %v875_v32 = vmul.f32 %v1843_v31, %v1581_v30 }
 0x1e9   : > { %v876_v33 = vsel %vm710_vm1, %v875_v32, 0.0 }
 0x1ea   : > { %877 = vadd.xlane.f32.xlu0 %v876_v33 }
 0x277   : > { %v878_v35 = vpop.xlane.xlu0 %877 }
 0x278   : > { %v886_v36 = vadd.f32 %v1582_v34, %v878_v35 }
 0x27a   : > { %v888_v37 = vsel %vm887_vm2, %v886_v36, -inf }
 0x27b   : > { %v889_v38 = vrot.slane %v888_v37, 4 }
 0x27d   : > { %v890_v39 = vmax.f32 %v888_v37, %v889_v38  ;;  %v1283_v38 = vld [vmem:[%s2840_s16] sm:$0xff] }
 0x27f   : > { %v891_v40 = vrot.slane %v890_v39, 2 }
 0x281   : > { %v892_v41 = vmax.f32 %v890_v39, %v891_v40  ;;  %v1284_v39 = vld [vmem:[%s2840_s16 + $0x8] sm:$0xff]  ;;  %v1285_v40 = vld [vmem:[%s2840_s16 + $0x10] sm:$0xff] }
 0x283   : > { %v893_v42 = vrot.slane %v892_v41, 1 }
 0x285   : > { %v894_v43 = vmax.f32 %v892_v41, %v893_v42  ;;  %v1727_v41 = vpack.c.bf16 %v1284_v39, %v1283_v38  ;;  %v1286_v42 = vld [vmem:[%s2840_s16 + $0x18] sm:$0xff] }
 0x287   : > { %v895_v44 = vsub.f32 %v886_v36, %v894_v43  ;;  %v1730_v43 = vpack.c.bf16 %v1286_v42, %v1285_v40 }
 0x289   : > { %v896_v45 = vmul.f32 1.442695, %v895_v44 }
 0x28b   : > { %1844 = vpow2.f32 %v896_v45  ;;  %v1271_v45 = vrot.slane %v2606_v15, %v864_v20 }
 0x295   : > { %v1845_v46 = vpop.eup %1844 }
 0x296   : > { %v898_v47 = vsel %vm887_vm2, %v1845_v46, 0.0 }
 0x297   : > { %v899_v48 = vrot.slane %v898_v47, 4 }
 0x299   : > { %v900_v49 = vadd.f32 %v899_v48, %v898_v47 }
 0x29b   : > { %v901_v50 = vrot.slane %v900_v49, 2 }
 0x29d   : > { %v902_v51 = vadd.f32 %v901_v50, %v900_v49 }
 0x29f   : > { %v903_v52 = vrot.slane %v902_v51, 1 }
 0x2a1   : > { %v904_v53 = vadd.f32 %v903_v52, %v902_v51 }
 0x2a3   : > { %1846 = vrcp.f32 %v904_v53 }
 0x2ad   : > { %v1847_v54 = vpop.eup %1846 }
 0x2ae   : > { %v906_v55 = vmul.f32 %v1847_v54, %v1845_v46 }
 0x2b0   : > { %907 = vxpose.xlu0.b32.start.end [1/1] (short) (narrow) %v906_v55, 8 }
 0x330   : > { %v923_v5 = vpop.trf.xlu0 }
 0x331   : > { %1650 = vmatmul.mubr.msk.f32.vlgmr.msra.gmra.mrb[2].mxu0 %vm939_vm3, %v923_v5 }
 0x332   : > { %1716 = vmatpush3.bf16.msra.mxu0 %v1715_v0  ;;  %1671 = vmatprep.mubr.msk.f32.mxu0 %vm2178_vm0, %v2179_v2 }
 0x333   : > { %1717 = vmatprep.subr.bf16.mxu0 %v2177_v1 }
 0x336   : > { %1719 = vmatpush3.bf16.msra.mxu0 %v1718_v6 }
 0x337   : > { %1726 = vmatprep.subr.bf16.mxu0 %v2177_v1 }
 0x339   : > { %1672 = vmatmul.mubr.msk.f32.vlgmr.msra.gmra.mrb[4].mxu0 %vm710_vm1, %v698_v7 }
 0x33a   : > { %1693 = vmatprep.mubr.msk.f32.mxu0 %vm2178_vm0, %v2179_v2  ;;  %1728 = vmatpush3.bf16.msra.mxu0 %v1727_v41 }
 0x33b   : > { %1729 = vmatprep.subr.bf16.mxu0 %v2177_v1 }
 0x33e   : > { %1731 = vmatpush3.bf16.msra.mxu0 %v1730_v43 }
 0x404   : > { %v1009_v13 = vpop.f32.mrb[2].mxu0 }
 0x405   : > { %v1651_v14 = vpop.f32.mrb[3].mxu0  ;;  %1661 = vmatmul.mubr.msk.f32.vlgmr.msra.gmra.mrb[2].mxu1 %vm710_vm1, %v1009_v13 }
 0x406   : > { %1722 = vmatpush3.bf16.msra.mxu1 %v1721_v10  ;;  %1682 = vmatprep.mubr.msk.f32.mxu1 %vm2178_vm0, %v2179_v2  ;;  %v1167_v2 = vld [vmem:[%s2839_s13] sm:$0x1]  ;;  %s1367_s13 = scalar_lea.sflag [#allocation17], %s2547_s17 }
 0x407   : > { %1723 = vmatprep.subr.bf16.mxu1 %v2177_v1 }
 0x40a   : > { %1725 = vmatpush3.bf16.msra.mxu1 %v1724_v16 }
 0x40c   : > { %v1163_v17 = vpop.f32.mrb[4].mxu0 }
 0x40d   : > { %1683 = vmatmul.mubr.msk.f32.vlgmr.msra.gmra.mrb[4].mxu1 %vm710_vm1, %v2606_v15  ;;  %v1673_v19 = vpop.f32.mrb[5].mxu0 }
 0x4d8   : > { %v1090_v21 = vpop.f32.mrb[2].mxu1 }
 0x4d9   : > { %v1164_v22 = vadd.f32 %v1163_v17, %v1090_v21  ;;  %v1662_v23 = vpop.f32.mrb[3].mxu1 }
 0x4db   : > { %v1168_v28 = vadd.f32 %v1167_v2, %v1164_v22 }
 0x4e0   : > { %v1240_v25 = vpop.f32.mrb[4].mxu1 }
 0x4e1   : > { %v1241_v26 = vadd.f32 %v1240_v25, %v1173_v24  ;;  %v1684_v27 = vpop.f32.mrb[5].mxu1 }
 0x4e3   : > { %1252 = vrot.lane.b32.xlu1 %v1241_v26, %s2180_s7  ;;  %v1244_v29 = vadd.f32 %v1241_v26, %v1168_v28 }
 0x4e5   : > { %v1587_v30 = vmul.f32 -1.442695, %v1244_v29 }
 0x4e7   : > { %1848 = vpow2.f32 %v1587_v30 }
 0x4f1   : > { %v1849_v31 = vpop.eup %1848 }
 0x4f2   : > { %v1248_v32 = vadd.f32 1.0, %v1849_v31 }
 0x4f4   : > { %1850 = vrcp.f32 %v1248_v32 }
 0x4fe   : > { %v1851_v33 = vpop.eup %1850 }
 0x4ff   : > { %v1262_v47 = vsub.f32 1.0, %v1851_v33 }
 0x555   : > { %v1253_v34 = vpop.permute.xlu1 %1252 }
 0x556   : > { %v1255_v35 = vmul.f32 %v1851_v33, %v1253_v34 }
 0x558   : > { %1257 = vrot.lane.b32.xlu1 %v1255_v35, %s2180_s7  ;;  %s2842_s7 = sld [smem:[#allocation40_spill]] }
 0x55e   : > { %s2678_s11 = scalar_lea.hbm %s2842_s7, %s1589_s19 }
 0x5ca   : > { %v1258_v36 = vpop.permute.xlu1 %1257 }
 0x5cb   : > { %v1260_v37 = vadd.f32 %v1258_v36, %v1168_v28 }
 0x5cd   : > { %1852 = vtanh.f32 %v1260_v37 }
 0x5d7   : > { %v1853_v44 = vpop.eup %1852 }
 0x5d8   : > { %1264 = vrot.lane.b32.xlu1 %v1853_v44, %s2181_s18 }
 0x5dc   : > { %1272 = vrot.lane.b32.xlu1 %v1271_v45, %s2182_s24 }
 0x64a   : > { %v1265_v46 = vpop.permute.xlu1 %1264 }
 0x64b   : > { %v1267_v49 = vmul.f32 %v1265_v46, %v1262_v47 }
 0x64e   : > { %v1273_v48 = vpop.permute.xlu1 %1272 }
 0x64f   : > { %v1275_v50 = vmul.f32 %v1851_v33, %v1273_v48 }
 0x651   : > { %v1276_v1 = vadd.f32 %v1275_v50, %v1267_v49 }
 0x653   : > { %1278 = vrot.lane.b32.xlu1 %v1276_v1, %s2181_s18 }
 0x6c5   : > { %v1279_v51 = vpop.permute.xlu1 %1278 }
 0x6c6   : > { %1282 = vst.msk [vmem:[%s695_s20] sm:$0x1] %vm1281_vm4, %v1279_v51  ;;  %1694 = vmatmul.mubr.msk.f32.vlgmr.msra.gmra.mrb[6].mxu0 %vm710_vm1, %v1279_v51 }
 0x6c7   : > { %2069 = shalt.err (!%p2066_p8)
}
 0x6c8   : > { %s2070_s23 = scalar_lea.hbm %s2678_s11, 16  ;;  %s2074_s22 = scalar_lea.hbm %s2842_s7, 128 }
 0x6c9   : > { %p2071_p13 = scmp.ne.s32.totalorder %s2678_s11, %s2070_s23  ;;  %p2075_p1 = scmp.lt.u32.totalorder %s2678_s11, %s2842_s7 }
 0x6ca   : > { %p2076_p10 = scmp.lt.u32.totalorder %s2074_s22, %s2070_s23  ;;  %p2078_p11 = scmp.lt.u32.totalorder %s2070_s23, %s2678_s11 }
 0x6cb   : > { %p2072_p9 = pnand %p2071_p13, %p2843_p7 }
 0x6cc   : > { %p2077_p12 = por %p2076_p10, %p2075_p1 }
 0x6cd   : > { %p2073_p4 = pneg %p2072_p9 }
 0x6ce   : > { %p2079_p6 = por %p2078_p11, %p2077_p12 }
 0x6d0   : > { %p2080_p2 = pnand %p2079_p6, %p2073_p4 }
 0x6d2   : > { %2083 = shalt.err (!%p2080_p2)
}
 0x6d3   : > { %1755 = dma.vmem_to_hbm [thread:$0]  (%p2843_p7), %s1393_s4, 16, %s2678_s11, %s1367_s13   ;;  %vm1360_vm5 = vcmask 122880  }
 0x6d4   : > { %s2844_s15 = sld [smem:[#allocation38_spill]]  ;;  %s689_s8 = scalar_lea.vmem [#allocation15], %s2547_s17 }
 0x6d5   : > { %s1379_s1 = sshll.u32 %s689_s8, 4  ;;  %s2845_s23 = sld [smem:[#allocation39_spill]]  ;;  %s2709_s1 = int_to_ptr.vmem [resolvable:$true] %s1379_s1 }
 0x6d6   : > { %s1363_s11 = scalar_lea.sflag [#allocation5], %s2547_s17  ;;  %s2084_s4 = scalar_lea.vmem %s2709_s1, 16 }
 0x6d7   : > { %p2085_p5 = scmp.ne.s32.totalorder %s2709_s1, %s2084_s4  ;;  %s2184_s13 = smov [#allocation15]  }
 0x6d8   : > { %s2088_s26 = sshll.u32 %s2184_s13, 4  ;;  %s2089_s26 = int_to_ptr.vmem [resolvable:$false] %s2088_s26 }
 0x6d9   : > { %p2086_p3 = pnand %p2085_p5, %p2843_p7  ;;  %s2090_s30 = scalar_lea.vmem %s2089_s26, 32 }
 0x6da   : > { %v1287_v15 = vld [vmem:[%s2844_s15] sm:$0x1]  ;;  %p2091_p8 = scmp.lt.s32.totalorder %s2709_s1, %s2089_s26  ;;  %p2092_p13 = scmp.lt.s32.totalorder %s2090_s30, %s2084_s4 }
 0x6db   : > { %s2707_s21 = scalar_lea.hbm %s2845_s23, %s1589_s19  ;;  %p2087_p0 = pneg %p2086_p3 }
 0x6dc   : > { %p2093_p9 = por %p2092_p13, %p2091_p8 }
 0x6de   : > { %p2094_p4 = pnand %p2093_p9, %p2087_p0 }
 0x799   : > { %v1356_v18 = vpop.f32.mrb[6].mxu0 }
 0x79a   : > { %v1357_v20 = vadd.f32 %v1356_v18, %v1287_v15  ;;  %v1695_v52 = vpop.f32.mrb[7].mxu0 }
 0x79c   : > { %1361 = vst.msk [vmem:[%s689_s8] sm:$0x1] %vm1360_vm5, %v1357_v20 }
 0x79d   : > { %2097 = shalt.err (!%p2094_p4)
}
 0x79e   : > { %s2098_s17 = scalar_lea.hbm %s2707_s21, 16  ;;  %s2102_s18 = scalar_lea.hbm %s2845_s23, 128 }
 0x79f   : > { %p2099_p1 = scmp.ne.s32.totalorder %s2707_s21, %s2098_s17  ;;  %p2103_p11 = scmp.lt.u32.totalorder %s2707_s21, %s2845_s23 }
 0x7a0   : > { %p2104_p6 = scmp.lt.u32.totalorder %s2102_s18, %s2098_s17  ;;  %p2106_p5 = scmp.lt.u32.totalorder %s2098_s17, %s2707_s21 }
 0x7a1   : > { %p2100_p10 = pnand %p2099_p1, %p2843_p7 }
 0x7a2   : > { %p2105_p2 = por %p2104_p6, %p2103_p11 }
 0x7a3   : > { %p2101_p12 = pneg %p2100_p10 }
 0x7a4   : > { %p2107_p3 = por %p2106_p5, %p2105_p2 }
 0x7a6   : > { %p2108_p0 = pnand %p2107_p3, %p2101_p12 }
 0x7a8   : > { %2111 = shalt.err (!%p2108_p0)
}
 0x7a9   : > { %1754 = dma.vmem_to_hbm [thread:$0]  (%p2843_p7), %s2709_s1, 16, %s2707_s21, %s1363_s11  }
 0x7aa PF: > { %s2846_s14 = sld [smem:[#allocation24_spill]]  ;;  %s2847_s15 = sld [smem:[#allocation29_spill]] }
 0x7ab   : > { %p1797_p8 = scmp.ge.s32.totalorder %s2166_s29, 2 }
 0x7b0   : > { %s1404_s8 = sand.u32 1, %s2846_s14   ;;  %p2848_p13 = scmp.ne.s32.totalorder %s2847_s15, 0 }
 0x7b1   : > { %s1405_s10 = scalar_lea.sflag [#allocation5], %s1404_s8 }
 0x7b2   : > { %p1782_p9 = pnand %p1797_p8, %p2848_p13 }
 0x7b4   : > { %2145 = dma.done.wait (!%p1782_p9), %s1405_s10, 16  }
 0x7b5   : > { %2147 = vsyncadd (!%p1782_p9), %s1405_s10, 4294967280  ;;  %s1413_s28 = scalar_lea.sflag [#allocation17], %s1404_s8 }
 0x7b6   : > { %2149 = dma.done.wait (!%p1782_p9), %s1413_s28, 16  }
 0x7b7   : > { %2151 = vsyncadd (!%p1782_p9), %s1413_s28, 4294967280  ;;  %s2849_s29 = sld [smem:[#allocation26_spill]]  ;;  %s2850_s0 = sld [smem:[#allocation25_spill]] }
 0x7b8   : > { %s2851_s28 = sld [smem:[#allocation27_spill]]  ;;  %s2852_s26 = smov %s2158_s27 }
 0x7bd   : > { %p41_p7 = scmp.ge.s32.totalorder %s2849_s29, 10   ;;  %s2853_s27 = smov %s2850_s0 }
 0x7bf   :  { %43 = sbr.rel (!%p41_p7) target bundleno = 23 (0x17), region = 186 }
 0x7c6   :  { %1417 = vsyncpa [#allocation4], 1 }
 0x7c7   :  { %1419 = vsyncpa [#allocation4 + $0x1], 1 }
 0x7c8   :  { %1420 = vsyncpa [#allocation7], 1 }
 0x7c9   :  { %1422 = vsyncpa [#allocation7 + $0x1], 1 }
 0x7ca   :  { %1423 = vsyncpa [#allocation10], 1 }
 0x7cb   :  { %1424 = vsyncpa [#allocation13], 1 }
 0x7cc   :  { %1425 = vsyncpa [#allocation5], 1 }
 0x7cd   :  { %1427 = vsyncpa [#allocation5 + $0x1], 1 }
 0x7ce   :  { %1428 = vsyncpa [#allocation17], 1 }
 0x7cf   :  { %1430 = vsyncpa [#allocation17 + $0x1], 1 }

</bundles_post_ra>
